<compile_context>
chip_gen: v6e
topology: v6e:2x2x1
jax: 0.10.0
libtpu: 0.0.40
codegen_flags: <defaults>
</compile_context>

<pallas_src>
import functools

import jax
import jax.numpy as jnp
from jax import lax
from jax.experimental import pallas as pl
from jax.experimental.pallas import tpu as pltpu


def _gat_kernel(x_ref, wt_ref, gbd_ref, inb_ref, b_ref, o_ref, *, compute_dtype):
    # x_ref:   (BN, C)    flattened batch of node features
    # wt_ref:  (C, Dp)    W^T, out-channel dim zero-padded to Dp (lane-dense)
    # gbd_ref: (BN, BN)   block-diagonal graph mask (graph on diag blocks, 0 off)
    # inb_ref: (BN, BN)   1.0 in-block, 0.0 off-block
    # b_ref:   (1, Dp)    bias, zero-padded
    # o_ref:   (BN, Dp)   output
    x = x_ref[...].astype(compute_dtype)
    wt = wt_ref[...].astype(compute_dtype)

    # h = x @ W^T for the whole batch in one MXU matmul (M = B*N).
    h = jnp.dot(x, wt, preferred_element_type=jnp.float32)          # (BN, Dp) f32
    hc = h.astype(compute_dtype)

    # scores = (h @ h^T) * block-diagonal graph — NT-form dot_general contracts
    # the last dims of both operands, so no explicit transpose is materialized.
    s = lax.dot_general(hc, hc, (((1,), (1,)), ((), ())),
                        preferred_element_type=jnp.float32)          # (BN, BN) f32
    s = s * gbd_ref[...]

    # masked_fill(scores == 0, -1e16): matches PyTorch (any exact zero masked).
    s = jnp.where(s == 0.0, jnp.float32(-1e16), s)
    # Off-block entries pushed far below -1e16 so a fully-masked (isolated)
    # node still normalizes uniformly over its own N in-block slots — exactly
    # the per-batch PyTorch semantics despite the block-diagonal batching.
    s = jnp.where(inb_ref[...] == 0.0, jnp.float32(-3e38), s)

    # softmax over the last axis; reciprocal on the EUP slot.
    m = jnp.max(s, axis=-1, keepdims=True)
    e = jnp.exp(s - m)
    denom = jnp.sum(e, axis=-1, keepdims=True)
    attn = e * pl.reciprocal(denom, approx=True)

    # out = attn @ h + b, bias added once on the full (BN, Dp) result.
    out = jnp.dot(attn.astype(compute_dtype), hc,
                  preferred_element_type=jnp.float32) + b_ref[...]
    o_ref[...] = out.astype(o_ref.dtype)


def graph_attention_layer(inputs, graph, W, b, *, compute_dtype=jnp.float32):
    """inputs: [B, N, C] f32, graph: [N, N] f32, W: [D, C] f32, b: [D] f32.

    Returns [B, N, D] f32.  For non-toy N, compute_dtype=jnp.bfloat16 is
    recommended on all TPU generations (score/mask/softmax always stay f32).
    """
    B, N, C = inputs.shape
    D = W.shape[0]
    BN = B * N
    Dp = ((D + 127) // 128) * 128                    # lane-dense out-channel dim

    f32 = jnp.float32
    # Wrapper-side (free XLA) plumbing.
    x2 = inputs.astype(f32).reshape(BN, C)                          # (BN, C)
    Wt = jnp.zeros((C, Dp), f32).at[:, :D].set(W.T.astype(f32))     # (C, Dp)
    b2 = jnp.zeros((1, Dp), f32).at[0, :D].set(b.astype(f32))       # (1, Dp)
    eyeB = jnp.eye(B, dtype=f32)
    graph_bd = jnp.kron(eyeB, graph.astype(f32))                    # (BN, BN)
    inblock = jnp.kron(eyeB, jnp.ones((N, N), f32))                 # (BN, BN)

    # Cost estimate (projection + score + aggregation matmuls, exp per score).
    flops = 2 * BN * C * Dp + 2 * (2 * BN * BN * Dp)
    io_bytes = 4 * (BN * C + C * Dp + 2 * BN * BN + Dp + BN * Dp)
    cost = pl.CostEstimate(flops=flops, transcendentals=BN * BN,
                           bytes_accessed=io_bytes)

    # VMEM limit sized from the actual working set (I/O double-buffered +
    # in-kernel intermediates) plus 2 MiB headroom — not a blanket 32 MiB.
    interm_bytes = 4 * (2 * BN * Dp + 2 * BN * BN)
    vmem_limit = int(2 * io_bytes + interm_bytes + (2 << 20))

    kernel = functools.partial(_gat_kernel, compute_dtype=compute_dtype)

    out2 = pl.pallas_call(
        kernel,
        out_shape=jax.ShapeDtypeStruct((BN, Dp), jnp.float32),
        grid_spec=pltpu.PrefetchScalarGridSpec(
            num_scalar_prefetch=0,
            grid=(1,),                                        # whole problem, one step
            in_specs=[
                pl.BlockSpec((BN, C), lambda i: (0, 0)),      # x (flattened)
                pl.BlockSpec((C, Dp), lambda i: (0, 0)),      # W^T (padded)
                pl.BlockSpec((BN, BN), lambda i: (0, 0)),     # block-diag graph
                pl.BlockSpec((BN, BN), lambda i: (0, 0)),     # in-block indicator
                pl.BlockSpec((1, Dp), lambda i: (0, 0)),      # bias (padded)
            ],
            out_specs=pl.BlockSpec((BN, Dp), lambda i: (0, 0)),
        ),
        compiler_params=pltpu.CompilerParams(
            dimension_semantics=("arbitrary",),
            vmem_limit_bytes=vmem_limit,
        ),
        cost_estimate=cost,
    )(x2, Wt, graph_bd, inblock, b2)

    return out2[:, :D].reshape(B, N, D)


if __name__ == "__main__":
    # Small shapes consistent with the module: B=2, N=16 nodes, in_c=8, out_c=16.
    B, N, C, D = 2, 16, 8, 16

    key = jax.random.PRNGKey(0)
    k_x, k_w, k_b, k_g = jax.random.split(key, 4)

    inputs = jax.random.normal(k_x, (B, N, C), dtype=jnp.float32)
    # Deterministic parameter init (module uses nn.init.normal_):
    W = jax.random.normal(k_w, (D, C), dtype=jnp.float32)
    b = jax.random.normal(k_b, (D,), dtype=jnp.float32)
    # Binary adjacency graph [N, N]:
    graph = (jax.random.uniform(k_g, (N, N)) > 0.5).astype(jnp.float32)

    out = graph_attention_layer(inputs, graph, W, b)
    out = jax.block_until_ready(out)

    # Pure-JAX reference with the same semantics as the PyTorch module.
    h_ref = jnp.einsum("bnc,dc->bnd", inputs, W)
    s_ref = jnp.einsum("bnd,bmd->bnm", h_ref, h_ref) * graph[None]
    s_ref = jnp.where(s_ref == 0.0, -1e16, s_ref)
    attn_ref = jax.nn.softmax(s_ref, axis=2)
    ref = jnp.einsum("bnm,bmd->bnd", attn_ref, h_ref) + b

    assert out.shape == (B, N, D)
    # Tolerance covers the approx-reciprocal softmax normalization (~2^-12 rel).
    assert jnp.allclose(out, ref, atol=2e-3, rtol=2e-3)
    print("KERNEL_OK")
</pallas_src>

<mosaic_0001>
module attributes {stable_mosaic.version = 11 : i64} {
  func.func @_gat_kernel(%arg0: i32, %arg1: memref<32x8xf32, #tpu.memory_space<vmem>>, %arg2: memref<8x128xf32, #tpu.memory_space<vmem>>, %arg3: memref<32x32xf32, #tpu.memory_space<vmem>>, %arg4: memref<32x32xf32, #tpu.memory_space<vmem>>, %arg5: memref<1x128xf32, #tpu.memory_space<vmem>>, %arg6: memref<32x128xf32, #tpu.memory_space<vmem>>) attributes {dimension_semantics = [#tpu.dimension_semantics<arbitrary>], iteration_bounds = array<i64: 1>, scalar_prefetch = 0 : i64, scratch_operands = 0 : i64, tpu.core_type = #tpu.core_type<tc>, window_params = [{pipeline_mode = #tpu.pipeline_mode<synchronous>, transform_indices = @transform_0, window_bounds = array<i64: 32, 8>}, {pipeline_mode = #tpu.pipeline_mode<synchronous>, transform_indices = @transform_1, window_bounds = array<i64: 8, 128>}, {pipeline_mode = #tpu.pipeline_mode<synchronous>, transform_indices = @transform_2, window_bounds = array<i64: 32, 32>}, {pipeline_mode = #tpu.pipeline_mode<synchronous>, transform_indices = @transform_3, window_bounds = array<i64: 32, 32>}, {pipeline_mode = #tpu.pipeline_mode<synchronous>, transform_indices = @transform_4, window_bounds = array<i64: 1, 128>}, {pipeline_mode = #tpu.pipeline_mode<synchronous>, transform_indices = @transform_5, window_bounds = array<i64: 32, 128>}]} {
    %c0 = arith.constant 0 : index
    %c0_0 = arith.constant 0 : index
    %0 = vector.load %arg1[%c0, %c0_0] : memref<32x8xf32, #tpu.memory_space<vmem>>, vector<32x8xf32>
    %c0_1 = arith.constant 0 : index
    %c0_2 = arith.constant 0 : index
    %1 = vector.load %arg2[%c0_1, %c0_2] : memref<8x128xf32, #tpu.memory_space<vmem>>, vector<8x128xf32>
    %cst = arith.constant dense<0.000000e+00> : vector<32x128xf32>
    %2 = tpu.matmul %0, %1, %cst {dimension_numbers = #tpu.dot_dimension_numbers<[1], [0], [0], [1], [0, 0, 1, 1], [], []>} : vector<32x8xf32>, vector<8x128xf32>, vector<32x128xf32> -> vector<32x128xf32>
    %cst_3 = arith.constant dense<0.000000e+00> : vector<32x32xf32>
    %3 = tpu.matmul %2, %2, %cst_3 {dimension_numbers = #tpu.dot_dimension_numbers<[1], [1], [0], [0], [0, 0, 1, 0], [], []>} : vector<32x128xf32>, vector<32x128xf32>, vector<32x32xf32> -> vector<32x32xf32>
    %c0_4 = arith.constant 0 : index
    %c0_5 = arith.constant 0 : index
    %4 = vector.load %arg3[%c0_4, %c0_5] : memref<32x32xf32, #tpu.memory_space<vmem>>, vector<32x32xf32>
    %5 = arith.mulf %3, %4 : vector<32x32xf32>
    %cst_6 = arith.constant 0.000000e+00 : f32
    %6 = vector.broadcast %cst_6 : f32 to vector<32x32xf32>
    %7 = arith.cmpf oeq, %5, %6 : vector<32x32xf32>
    %cst_7 = arith.constant -1.000000e+16 : f32
    %8 = vector.broadcast %cst_7 : f32 to vector<32x32xf32>
    %9 = arith.select %7, %8, %5 : vector<32x32xi1>, vector<32x32xf32>
    %c0_8 = arith.constant 0 : index
    %c0_9 = arith.constant 0 : index
    %10 = vector.load %arg4[%c0_8, %c0_9] : memref<32x32xf32, #tpu.memory_space<vmem>>, vector<32x32xf32>
    %cst_10 = arith.constant 0.000000e+00 : f32
    %11 = vector.broadcast %cst_10 : f32 to vector<32x32xf32>
    %12 = arith.cmpf oeq, %10, %11 : vector<32x32xf32>
    %cst_11 = arith.constant -3.000000e+38 : f32
    %13 = vector.broadcast %cst_11 : f32 to vector<32x32xf32>
    %14 = arith.select %12, %13, %9 : vector<32x32xi1>, vector<32x32xf32>
    %cst_12 = arith.constant dense<0xFF800000> : vector<32xf32>
    %15 = vector.multi_reduction <maximumf>, %14, %cst_12 [1] : vector<32x32xf32> to vector<32xf32>
    %16 = vector.shape_cast %15 : vector<32xf32> to vector<32x1xf32>
    %17 = vector.broadcast %16 : vector<32x1xf32> to vector<32x32xf32>
    %18 = arith.subf %14, %17 : vector<32x32xf32>
    %19 = math.exp %18 : vector<32x32xf32>
    %cst_13 = arith.constant dense<0.000000e+00> : vector<32xf32>
    %20 = vector.multi_reduction <add>, %19, %cst_13 [1] : vector<32x32xf32> to vector<32xf32>
    %21 = vector.shape_cast %20 : vector<32xf32> to vector<32x1xf32>
    %22 = tpu.reciprocal %21 {approx = true} : vector<32x1xf32> -> vector<32x1xf32>
    %23 = vector.broadcast %22 : vector<32x1xf32> to vector<32x32xf32>
    %24 = arith.mulf %19, %23 : vector<32x32xf32>
    %cst_14 = arith.constant dense<0.000000e+00> : vector<32x128xf32>
    %25 = tpu.matmul %24, %2, %cst_14 {dimension_numbers = #tpu.dot_dimension_numbers<[1], [0], [0], [1], [0, 0, 1, 1], [], []>} : vector<32x32xf32>, vector<32x128xf32>, vector<32x128xf32> -> vector<32x128xf32>
    %c0_15 = arith.constant 0 : index
    %c0_16 = arith.constant 0 : index
    %26 = vector.load %arg5[%c0_15, %c0_16] : memref<1x128xf32, #tpu.memory_space<vmem>>, vector<1x128xf32>
    %27 = vector.broadcast %26 : vector<1x128xf32> to vector<32x128xf32>
    %28 = arith.addf %25, %27 : vector<32x128xf32>
    %c0_17 = arith.constant 0 : index
    %c0_18 = arith.constant 0 : index
    %29 = vector.load %arg6[%c0_17, %c0_18] : memref<32x128xf32, #tpu.memory_space<vmem>>, vector<32x128xf32>
    tpu.vector_store %arg6[%c0_17, %c0_18], %28 {strides = array<i32>} : memref<32x128xf32, #tpu.memory_space<vmem>>, vector<32x128xf32>,
    return
  }
  func.func @transform_0(%arg0: i32) -> (i32, i32) {
    %c0_i32 = arith.constant 0 : i32
    %c0_i32_0 = arith.constant 0 : i32
    %c0_i32_1 = arith.constant 0 : i32
    return %c0_i32, %c0_i32_0 : i32, i32
  }
  func.func @transform_1(%arg0: i32) -> (i32, i32) {
    %c0_i32 = arith.constant 0 : i32
    %c0_i32_0 = arith.constant 0 : i32
    %c0_i32_1 = arith.constant 0 : i32
    return %c0_i32, %c0_i32_0 : i32, i32
  }
  func.func @transform_2(%arg0: i32) -> (i32, i32) {
    %c0_i32 = arith.constant 0 : i32
    %c0_i32_0 = arith.constant 0 : i32
    %c0_i32_1 = arith.constant 0 : i32
    return %c0_i32, %c0_i32_0 : i32, i32
  }
  func.func @transform_3(%arg0: i32) -> (i32, i32) {
    %c0_i32 = arith.constant 0 : i32
    %c0_i32_0 = arith.constant 0 : i32
    %c0_i32_1 = arith.constant 0 : i32
    return %c0_i32, %c0_i32_0 : i32, i32
  }
  func.func @transform_4(%arg0: i32) -> (i32, i32) {
    %c0_i32 = arith.constant 0 : i32
    %c0_i32_0 = arith.constant 0 : i32
    %c0_i32_1 = arith.constant 0 : i32
    return %c0_i32, %c0_i32_0 : i32, i32
  }
  func.func @transform_5(%arg0: i32) -> (i32, i32) {
    %c0_i32 = arith.constant 0 : i32
    %c0_i32_0 = arith.constant 0 : i32
    %c0_i32_1 = arith.constant 0 : i32
    return %c0_i32, %c0_i32_0 : i32, i32
  }
}

</mosaic_0001>

<bundles_post_ra>
// kernel: tpu_custom_call.1
= control target key start
LH: loop header
LB: loop body
LE: loop exit
PB: predicated region body
PF: predicated region fallthrough
CT: control target
= control target key end

     0   :  { %10 = vsyncpa [#allocation3], 0  ;;  %s639_s0 = inlined_call_operand.vmem [shape: f32[32,8], index: 0, kind: input, shape index: {}]   ;;  %s640_s1 = inlined_call_operand.vmem [shape: f32[8,128], index: 1, kind: input, shape index: {}]   ;;  %s641_s2 = inlined_call_operand.vmem [shape: f32[32,32], index: 2, kind: input, shape index: {}]   ;;  %s642_s3 = inlined_call_operand.hbm [shape: f32[32,32], index: 3, kind: input, shape index: {}]   ;;  %s643_s4 = inlined_call_operand.vmem [shape: f32[1,128], index: 4, kind: input, shape index: {}]   ;;  %s644_s5 = inlined_call_operand.hbm [shape: f32[32,128], index: 5, kind: output, shape index: {}]  }
   0x1   :  { %11 = vsyncpa [#allocation4], 0  ;;  %s551_s18 = smov [#allocation2]  }
   0x2   :  { %s23_s19 = sshll.u32 %s551_s18, 4  ;;  %s24_s19 = int_to_ptr.vmem [resolvable:$true] %s23_s19 }
   0x3   :  { %s515_s20 = scalar_lea.vmem %s24_s19, 512  ;;  %p520_p1 = scmp.lt.s32.totalorder %s24_s19, %s24_s19 }
   0x4   :  { %p516_p0 = scmp.ne.s32.totalorder %s24_s19, %s515_s20  ;;  %p521_p2 = scmp.lt.s32.totalorder %s515_s20, %s515_s20 }
   0x6   :  { %p522_p3 = por %p521_p2, %p520_p1 }
   0x8   :  { %p523_p4 = pnand %p522_p3, %p516_p0 }
   0xa   :  { %526 = shalt.err (!%p523_p4)
}
   0xb   :  { %s552_s21 = smov 128   ;;  %s553_s22 = smov 8  }
   0xc   :  { %29 = dma.hbm_to_vmem [thread:$0]  %s642_s3, 512, %s24_s19, [#allocation3], %s552_s21, %s552_s21, %s553_s22  }
   0xd   :  { %547 = dma.done.wait [#allocation3], 512  }
   0xe   :  { %548 = vsyncadd [#allocation3], 4294966784  ;;  %vm40_vm0 = vcmask 64512   ;;  %v39_v0 = vld [vmem:[%s640_s1] sm:$0xff]  ;;  %v36_v2 = vld [vmem:[%s639_s0 + $0x8] sm:$0xff]  ;;  %vm251_vm6 = vcmask 261120  }
   0xf   :  { %v35_v1 = vld [vmem:[%s639_s0] sm:$0xff]  ;;  %451 = vmatprep.subr.mxu0 %v39_v0  ;;  %v37_v3 = vld [vmem:[%s639_s0 + $0x10] sm:$0xff]  ;;  %v38_v4 = vld [vmem:[%s639_s0 + $0x18] sm:$0xff]  ;;  %s554_s16 = smov [#allocation5]  }
  0x10   :  { %453 = vmatprep.mubr.msk.f32.mxu0 %vm40_vm0, %v35_v1  ;;  %452 = vmatpush3.msra.mxu0 %v39_v0  ;;  %v224_v9 = vld [vmem:[%s641_s2 + $0x8] sm:$0xff]  ;;  %v223_v11 = vld [vmem:[%s641_s2] sm:$0xff]  ;;  %v226_v15 = vld [vmem:[%s641_s2 + $0x18] sm:$0xff]  ;;  %s409_s17 = sshll.u32 %s554_s16, 4  ;;  %s410_s17 = int_to_ptr.vmem [resolvable:$true] %s409_s17 }
  0x11   :  { %454 = vmatmul.mubr.msk.f32.vlgmr.msra.gmra.mxu0 %vm40_vm0, %v36_v2  ;;  %v239_v13 = vld [vmem:[#allocation2] sm:$0xff]  ;;  %v240_v17 = vld [vmem:[#allocation2 + $0x8] sm:$0xff]  ;;  %v225_v19 = vld [vmem:[%s641_s2 + $0x10] sm:$0xff]  ;;  %s527_s18 = scalar_lea.vmem %s410_s17, 512  ;;  %p532_p6 = scmp.lt.s32.totalorder %s410_s17, %s410_s17 }
  0x12   :  { %456 = vmatprep.mubr.msk.f32.mxu0 %vm40_vm0, %v37_v3  ;;  %vm243_vm2 = vcmp.eq.f32.partialorder %v239_v13, 0.0  ;;  %v241_v21 = vld [vmem:[#allocation2 + $0x10] sm:$0xff]  ;;  %vm244_vm4 = vcmp.eq.f32.partialorder %v240_v17, 0.0  ;;  %v242_v27 = vld [vmem:[#allocation2 + $0x18] sm:$0xff]  ;;  %p528_p5 = scmp.ne.s32.totalorder %s410_s17, %s527_s18  ;;  %p533_p7 = scmp.lt.s32.totalorder %s527_s18, %s527_s18 }
  0x13   :  { %vm245_vm7 = vcmp.eq.f32.partialorder %v241_v21, 0.0  ;;  %vm246_vm9 = vcmp.eq.f32.partialorder %v242_v27, 0.0 }
  0x14   :  { %p534_p8 = por %p533_p7, %p532_p6 }
  0x15   :  { %457 = vmatmul.mubr.msk.f32.gmra.mxu0 %vm40_vm0, %v38_v4 }
  0x16   :  { %p535_p9 = pnand %p534_p8, %p528_p5 }
  0xd1   :  { %v455_v5 = vpop.f32.mrf.mxu0 }
  0xd3   :  { %v119_v6 = vpop.f32.mrf.mxu0 }
  0xd4   :  { %467 = vmatprep.mubr.f32.mxu1 %v119_v6 }
  0xd5   :  { %v458_v7 = vpop.f32.mrf.mxu0 }
  0xd6   :  { %459 = vmatprep.subr.mxu1 %v458_v7  ;;  %473 = vmatprep.subr.mxu0 %v458_v7 }
  0xd7   :  { %v129_v8 = vpop.f32.mrf.mxu0  ;;  %460 = vmatpush3.xpose.msra.mxu1 %v458_v7  ;;  %474 = vmatpush3.msra.mxu0 %v458_v7 }
  0xd8   :  { %461 = vmatprep.subr.mxu1 %v129_v8  ;;  %475 = vmatprep.subr.mxu0 %v129_v8 }
  0xd9   :  { %476 = vmatpush3.msra.mxu0 %v129_v8 }
  0xda   :  { %477 = vmatprep.subr.mxu0 %v455_v5 }
  0xdb   :  { %462 = vmatpush3.xpose.msra.mxu1 %v129_v8  ;;  %478 = vmatpush3.msra.mxu0 %v455_v5 }
  0xdc   :  { %463 = vmatprep.subr.mxu1 %v455_v5  ;;  %479 = vmatprep.subr.mxu0 %v119_v6 }
  0xdd   :  { %480 = vmatpush3.msra.mxu0 %v119_v6 }
  0xdf   :  { %464 = vmatpush3.xpose.msra.mxu1 %v455_v5 }
  0xe0   :  { %465 = vmatprep.subr.mxu1 %v119_v6 }
  0xe3   :  { %466 = vmatpush3.xpose.msra.mxu1 %v119_v6 }
  0xe6   :  { %468 = vmatmul.mubr.f32.vlgmr.msra.gmra.mxu1 %v455_v5  ;;  %v425_v5 = vld [vmem:[%s643_s4] ss:$0 sm:$0xff] }
  0xe7   :  { %470 = vmatprep.mubr.f32.mxu1 %v129_v8 }
  0xea   :  { %471 = vmatmul.mubr.f32.gmra.mxu1 %v458_v7 }
 0x1a6   :  { %v469_v10 = vpop.f32.mrf.mxu1 }
 0x1a7   :  { %v228_v12 = vmul.f32 %v469_v10, %v224_v9 }
 0x1a8   :  { %v204_v14 = vpop.f32.mrf.mxu1 }
 0x1a9   :  { %vm232_vm1 = vcmp.eq.f32.partialorder %v228_v12, 0.0  ;;  %v227_v16 = vmul.f32 %v223_v11, %v204_v14 }
 0x1aa   :  { %v472_v18 = vpop.f32.mrf.mxu1  ;;  %v236_v24 = vsel %vm232_vm1, -1e+16, %v228_v12 }
 0x1ab   :  { %vm231_vm3 = vcmp.eq.f32.partialorder %v227_v16, 0.0  ;;  %v230_v20 = vmul.f32 %v472_v18, %v226_v15  ;;  %v248_v29 = vsel %vm244_vm4, -3e+38, %v236_v24 }
 0x1ac   :  { %v214_v22 = vpop.f32.mrf.mxu1  ;;  %v235_v23 = vsel %vm231_vm3, -1e+16, %v227_v16  ;;  %v255_v33 = vsel %vm251_vm6, %v248_v29, -inf }
 0x1ad   :  { %vm234_vm5 = vcmp.eq.f32.partialorder %v230_v20, 0.0  ;;  %v229_v25 = vmul.f32 %v225_v19, %v214_v22  ;;  %v247_v26 = vsel %vm243_vm2, -3e+38, %v235_v23 }
 0x1ae   :  { %v252_v28 = vsel %vm251_vm6, %v247_v26, -inf  ;;  %v238_v31 = vsel %vm234_vm5, -1e+16, %v230_v20 }
 0x1af   :  { %vm233_vm8 = vcmp.eq.f32.partialorder %v229_v25, 0.0  ;;  %253 = vmax.xlane.f32.xlu0 %v252_v28  ;;  %v250_v35 = vsel %vm246_vm9, -3e+38, %v238_v31 }
 0x1b0   :  { %v237_v30 = vsel %vm233_vm8, -1e+16, %v229_v25  ;;  %v261_v36 = vsel %vm251_vm6, %v250_v35, -inf }
 0x1b1   :  { %v249_v32 = vsel %vm245_vm7, -3e+38, %v237_v30 }
 0x1b2   :  { %v258_v34 = vsel %vm251_vm6, %v249_v32, -inf }
 0x1b3   :  { %256 = vmax.xlane.f32.xlu0 %v255_v33  ;;  %259 = vmax.xlane.f32.xlu1 %v258_v34 }
 0x1b7   :  { %262 = vmax.xlane.f32.xlu1 %v261_v36 }
 0x238   :  { %v254_v37 = vpop.xlane.xlu0 %253 }
 0x239   :  { %v264_v38 = vsub.f32 %v247_v26, %v254_v37 }
 0x23b   :  { %v268_v39 = vmul.f32 1.442695, %v264_v38 }
 0x23c   :  { %v257_v40 = vpop.xlane.xlu0 %256  ;;  %v260_v41 = vpop.xlane.xlu1 %259 }
 0x23d   :  { %491 = vpow2.f32 %v268_v39  ;;  %v265_v42 = vsub.f32 %v248_v29, %v257_v40  ;;  %v266_v43 = vsub.f32 %v249_v32, %v260_v41 }
 0x23f   :  { %v270_v44 = vmul.f32 1.442695, %v265_v42  ;;  %v272_v45 = vmul.f32 1.442695, %v266_v43 }
 0x240   :  { %v263_v46 = vpop.xlane.xlu1 %262 }
 0x241   :  { %493 = vpow2.f32 %v270_v44  ;;  %v267_v47 = vsub.f32 %v250_v35, %v263_v46 }
 0x242   :  { %495 = vpow2.f32 %v272_v45 }
 0x243   :  { %v274_v48 = vmul.f32 1.442695, %v267_v47 }
 0x245   :  { %497 = vpow2.f32 %v274_v48 }
 0x24a   :  { %v492_v49 = vpop.eup %491 }
 0x24b   :  { %v276_v50 = vsel %vm251_vm6, %v492_v49, 0.0 }
 0x24c   :  { %277 = vadd.xlane.f32.xlu0 %v276_v50 }
 0x24e   :  { %v494_v51 = vpop.eup %493 }
 0x24f   :  { %v496_v52 = vpop.eup %495  ;;  %v279_v53 = vsel %vm251_vm6, %v494_v51, 0.0 }
 0x250   :  { %280 = vadd.xlane.f32.xlu1 %v279_v53  ;;  %v282_v54 = vsel %vm251_vm6, %v496_v52, 0.0 }
 0x251   :  { %283 = vadd.xlane.f32.xlu0 %v282_v54 }
 0x252   :  { %v498_v55 = vpop.eup %497 }
 0x253   :  { %v285_v56 = vsel %vm251_vm6, %v498_v55, 0.0 }
 0x254   :  { %286 = vadd.xlane.f32.xlu1 %v285_v56 }
 0x2d5   :  { %v278_v57 = vpop.xlane.xlu0 %277 }
 0x2d6   :  { %499 = vrcp.f32 %v278_v57 }
 0x2d9   :  { %v281_v58 = vpop.xlane.xlu1 %280 }
 0x2da   :  { %v284_v59 = vpop.xlane.xlu0 %283  ;;  %501 = vrcp.f32 %v281_v58 }
 0x2db   :  { %503 = vrcp.f32 %v284_v59 }
 0x2dd   :  { %v287_v60 = vpop.xlane.xlu1 %286 }
 0x2de   :  { %505 = vrcp.f32 %v287_v60 }
 0x2e3   :  { %v500_v61 = vpop.eup %499 }
 0x2e4   :  { %v292_v62 = vmul.f32 %v500_v61, %v492_v49 }
 0x2e6   :  { %481 = vmatprep.mubr.msk.f32.mxu0 %vm251_vm6, %v292_v62 }
 0x2e7   :  { %v502_v63 = vpop.eup %501 }
 0x2e8   :  { %v504_v0 = vpop.eup %503  ;;  %v293_v1 = vmul.f32 %v502_v63, %v494_v51 }
 0x2e9   :  { %v294_v2 = vmul.f32 %v504_v0, %v496_v52 }
 0x2ea   :  { %482 = vmatmul.mubr.msk.f32.vlgmr.msra.gmra.mxu0 %vm251_vm6, %v293_v1 }
 0x2eb   :  { %v506_v3 = vpop.eup %505  ;;  %484 = vmatprep.mubr.msk.f32.mxu0 %vm251_vm6, %v294_v2 }
 0x2ec   :  { %v295_v4 = vmul.f32 %v506_v3, %v498_v55 }
 0x2ee   :  { %485 = vmatmul.mubr.msk.f32.gmra.mxu0 %vm251_vm6, %v295_v4 }
 0x3aa   :  { %v483_v6 = vpop.f32.mrf.mxu0 }
 0x3ab   :  { %v387_v7 = vadd.f32 %v483_v6, %v425_v5 }
 0x3ac   :  { %v381_v8 = vpop.f32.mrf.mxu0 }
 0x3ad   :  { %401 = vst [vmem:[#allocation5 + $0x8] sm:$0xff] %v387_v7  ;;  %v382_v9 = vadd.f32 %v425_v5, %v381_v8 }
 0x3ae   :  { %v486_v10 = vpop.f32.mrf.mxu0 }
 0x3af   :  { %400 = vst [vmem:[#allocation5] sm:$0xff] %v382_v9  ;;  %v397_v11 = vadd.f32 %v486_v10, %v425_v5 }
 0x3b0   :  { %v391_v12 = vpop.f32.mrf.mxu0 }
 0x3b1   :  { %403 = vst [vmem:[#allocation5 + $0x18] sm:$0xff] %v397_v11  ;;  %v392_v13 = vadd.f32 %v425_v5, %v391_v12 }
 0x3b3   :  { %402 = vst [vmem:[#allocation5 + $0x10] sm:$0xff] %v392_v13 }
 0x3b4   :  { %538 = shalt.err (!%p535_p9)
}
 0x3b5   :  { %415 = dma.vmem_to_hbm [thread:$0]  %s410_s17, 512, %s644_s5, [#allocation4], %s552_s21, %s552_s21, %s553_s22  }
 0x3b6   :  { %549 = dma.done.wait [#allocation4], 512  }
 0x3b7   :  { %550 = vsyncadd [#allocation4], 4294966784 }
 0x3b8   :  { %419 = vsyncpa [#allocation3], 1 }
 0x3b9   :  { %420 = vsyncpa [#allocation4], 1 }

</bundles_post_ra>
